<compile_context>
chip_gen: v5e
topology: v5e:2x2
jax: 0.10.0
libtpu: 0.0.40
codegen_flags: <defaults>
</compile_context>

<pallas_src>
import jax
import jax.numpy as jnp
from jax.experimental import pallas as pl
from jax.experimental.pallas import tpu as pltpu


# ----------------------------------------------------------------------------
# Bidirectional multi-layer LSTM (PyTorch semantics), plain JAX glue.
# TODO(synk): the LSTM recurrence is an inherently sequential scan; it stays in
#             lax.scan rather than a Pallas kernel.
# ----------------------------------------------------------------------------
def _bilstm_layer(x, fwd, bwd):
    """One bidirectional LSTM layer (PyTorch nn.LSTM semantics).

    Both directions run in a single lax.scan with a direction batch axis, so
    each step does one batched gate matmul and one batched activation set.
    The time-independent input projection is hoisted out of the scan as a
    single (T*B, I) @ (I, 8H) MXU GEMM.
    """
    T, B, _ = x.shape
    w_ih_f, w_hh_f, b_ih_f, b_hh_f = fwd
    w_ih_b, w_hh_b, b_ih_b, b_hh_b = bwd
    H = w_hh_f.shape[1]

    w_ih = jnp.concatenate([w_ih_f, w_ih_b], axis=0)             # (8H, I)
    bias = jnp.concatenate([b_ih_f + b_hh_f, b_ih_b + b_hh_b])   # (8H,)
    xg = jnp.einsum("tbi,gi->tbg", x, w_ih) + bias               # (T, B, 8H)
    xg_f, xg_b = jnp.split(xg, 2, axis=-1)                       # (T, B, 4H)
    xg2 = jnp.stack([xg_f, xg_b[::-1]], axis=1)                  # (T, 2, B, 4H)
    w_hh = jnp.stack([w_hh_f.T, w_hh_b.T], axis=0)               # (2, H, 4H)

    def step(carry, xg_t):
        h, cst = carry                                           # (2, B, H)
        gates = xg_t + jnp.einsum("dbh,dhg->dbg", h, w_hh)       # (2, B, 4H)
        i, f, g, o = jnp.split(gates, 4, axis=-1)                # PyTorch order
        i = jax.nn.sigmoid(i)
        f = jax.nn.sigmoid(f)
        g = jnp.tanh(g)
        o = jax.nn.sigmoid(o)
        cst = f * cst + i * g
        h = o * jnp.tanh(cst)
        return (h, cst), h

    zeros = jnp.zeros((2, B, H), x.dtype)
    _, ys = jax.lax.scan(step, (zeros, zeros), xg2)              # (T, 2, B, H)
    return jnp.concatenate([ys[:, 0], ys[:, 1][::-1]], axis=-1)  # (T, B, 2H)


def bilstm(x, layers):
    out = x
    for layer in layers:
        out = _bilstm_layer(out, layer["fwd"], layer["bwd"])
    return out


# ----------------------------------------------------------------------------
# L-tile selection: largest divisor of L whose per-step tile fits a VMEM
# budget while keeping >= 4 grid steps (>= 2 blocks per v7x TensorCore and a
# DMA-pipeline steady state).
# ----------------------------------------------------------------------------
_VMEM_BUDGET = 24 * 1024 * 1024       # headroom under the 32 MiB scoped default


def _pick_l_tile(L, bytes_per_slice, min_steps=4):
    target = min(min_steps, L)
    lt = 1
    for cand in range(1, L + 1):
        if L % cand != 0:
            continue
        if cand * bytes_per_slice > _VMEM_BUDGET:
            continue
        if L // cand < target:
            continue
        lt = cand
    return lt


# ----------------------------------------------------------------------------
# Pallas kernel 1: BiDAF attention layer, batched over a tile of L slices.
#   S[l,n,m] = w_c.c[l,n] + w_q.q[l,m] + w_cq.(c[l,n]*q[l,m]) + (b_c+b_q+b_cq)
# ----------------------------------------------------------------------------
def _att_kernel(c_ref, q_ref, w_ref, b_ref, g_ref):
    f32 = jnp.float32
    c = c_ref[...]                        # (Lt, N, 2H)
    q = q_ref[...]                        # (Lt, Nq, 2H)
    wc = w_ref[0:1, :]                    # (1, 2H)
    wq = w_ref[1:2, :]
    wcq = w_ref[2:3, :]
    bias = b_ref[0]                       # pre-summed scalar bias (SMEM)

    # Cross term on the MXU (batched over l); the two rank-1 similarity terms
    # on the VPU/XLU (multiply + last-axis reduce) instead of degenerate
    # 1-lane MXU pushes.
    cross = jnp.einsum("lnh,lmh->lnm", c * wcq, q, preferred_element_type=f32)
    sc = jnp.sum(c * wc, axis=-1, keepdims=True)                 # (Lt, N, 1)
    sq = jnp.sum(q * wq, axis=-1)[:, None, :]                    # (Lt, 1, Nq)
    S = cross + sc + sq + bias                                   # (Lt, N, Nq)

    # context -> query attention: softmax over query positions (lane axis).
    mx = jnp.max(S, axis=2, keepdims=True)
    e = jnp.exp(S - mx)
    a = e * pl.reciprocal(jnp.sum(e, axis=2, keepdims=True), approx=True)
    c2q = jnp.einsum("lnm,lmh->lnh", a, q, preferred_element_type=f32)

    # query -> context attention: softmax over context positions of row maxima.
    bmx = jnp.max(mx, axis=1, keepdims=True)                     # (Lt, 1, 1)
    be = jnp.exp(mx - bmx)
    batt = be * pl.reciprocal(jnp.sum(be, axis=1, keepdims=True), approx=True)
    q2c = jnp.sum(batt * c, axis=1, keepdims=True)               # (Lt, 1, 2H)

    # G = [c, c2q, c*c2q, c*q2c]: one lane-dense full-width store of the 8H
    # slab (no masked sub-128 slice stores).
    g_ref[...] = jnp.concatenate([c, c2q, c * c2q, c * q2c], axis=-1)


def att_layer_pallas(c, q, w_c, w_q, w_cq, b_c, b_q, b_cq):
    L, N, D2 = c.shape
    Lq, Nq, _ = q.shape
    assert Lq == L, "att_layer broadcasting requires equal leading dims"
    W = jnp.stack([w_c, w_q, w_cq], axis=0).astype(jnp.float32)       # (3, 2H)
    Bv = jnp.reshape(b_c + b_q + b_cq, (1,)).astype(jnp.float32)      # pre-summed

    # VMEM-budgeted tile: double-buffered c/q/G plus the (N, Nq) score slabs.
    bytes_per_slice = 4 * (2 * (N * D2 + Nq * D2 + N * 4 * D2) + 3 * N * Nq)
    lt = _pick_l_tile(L, bytes_per_slice)
    assert L % lt == 0

    # TODO(synk): at production sizes cast c/q (and G) to bf16 with f32
    #             accumulation to halve HBM traffic and double MXU rate;
    #             kept f32 here so the toy correctness check stays tight.
    return pl.pallas_call(
        _att_kernel,
        out_shape=jax.ShapeDtypeStruct((L, N, 4 * D2), jnp.float32),
        grid=(L // lt,),
        in_specs=[
            pl.BlockSpec((lt, N, D2), lambda l: (l, 0, 0)),
            pl.BlockSpec((lt, Nq, D2), lambda l: (l, 0, 0)),
            pl.BlockSpec((3, D2), lambda l: (0, 0)),
            pl.BlockSpec(memory_space=pltpu.MemorySpace.SMEM),
        ],
        out_specs=pl.BlockSpec((lt, N, 4 * D2), lambda l: (l, 0, 0)),
        compiler_params=pltpu.CompilerParams(
            dimension_semantics=("parallel",),
            vmem_limit_bytes=32 * 1024 * 1024),
        cost_estimate=pl.CostEstimate(
            flops=4 * L * N * Nq * D2,
            transcendentals=L * N * (Nq + 1),
            bytes_accessed=4 * (L * N * D2 + L * Nq * D2 + 3 * D2
                                + L * N * 4 * D2)),
    )(c, q, W, Bv)


# ----------------------------------------------------------------------------
# Pallas kernel 2: span heads
#   p1 = softmax_N(g.w1g + m.w1m),  p2 = softmax_N(g.w2g + m2.w2m)
#   (the scalar biases cancel under the softmax and are dropped)
#   Single fused batched GEMM with the context axis on the MXU output-lane
#   side; lane-dense (Lt, 2, N) output written with one full-width store.
# ----------------------------------------------------------------------------
def _head_kernel(g_ref, m_ref, m2_ref, w_ref, out_ref):
    Lt = g_ref.shape[0]
    f32 = jnp.float32

    # One lane-concat of the three feature slabs -> one (2,12H)x(12H,N)
    # batched MXU GEMM per l-slice (N on the output lane axis).
    x = jnp.concatenate([g_ref[...], m_ref[...], m2_ref[...]], axis=-1)
    w = jnp.broadcast_to(w_ref[...][None], (Lt,) + w_ref.shape)        # (Lt,2,12H)
    logits = jnp.einsum("lhf,lnf->lhn", w, x,
                        preferred_element_type=f32)                    # (Lt,2,N)

    # Exact softmax over context positions (lane axis), both heads at once.
    mx = jnp.max(logits, axis=-1, keepdims=True)
    e = jnp.exp(logits - mx)
    out_ref[...] = e / jnp.sum(e, axis=-1, keepdims=True)


def heads_pallas(g, m, m2, w1g, w1m, w2g, w2m, b1g, b1m, b2g, b2m):
    # NOTE: the per-head scalar biases are added right before a softmax in the
    # reference, so they cancel exactly; accepted for API parity, unused.
    del b1g, b1m, b2g, b2m
    L, N, D8 = g.shape
    D2 = m.shape[2]
    D12 = D8 + 2 * D2

    zeros = jnp.zeros_like(w1m)
    w_all = jnp.stack([
        jnp.concatenate([w1g, w1m, zeros]),     # head 1 uses m
        jnp.concatenate([w2g, zeros, w2m]),     # head 2 uses m2
    ], axis=0).astype(jnp.float32)              # (2, 12H)

    bytes_per_slice = 4 * (2 * (N * D8 + 2 * N * D2 + 2 * N)    # dbl-buffered I/O
                           + N * D12 + 2 * N)                   # concat + logits
    lt = _pick_l_tile(L, bytes_per_slice)
    assert L % lt == 0

    out = pl.pallas_call(
        _head_kernel,
        out_shape=jax.ShapeDtypeStruct((L, 2, N), jnp.float32),
        grid=(L // lt,),
        in_specs=[
            pl.BlockSpec((lt, N, D8), lambda l: (l, 0, 0)),
            pl.BlockSpec((lt, N, D2), lambda l: (l, 0, 0)),
            pl.BlockSpec((lt, N, D2), lambda l: (l, 0, 0)),
            pl.BlockSpec((2, D12), lambda l: (0, 0)),
        ],
        out_specs=pl.BlockSpec((lt, 2, N), lambda l: (l, 0, 0)),
        compiler_params=pltpu.CompilerParams(
            dimension_semantics=("parallel",),
            vmem_limit_bytes=32 * 1024 * 1024),
        cost_estimate=pl.CostEstimate(
            flops=4 * L * N * D12,
            transcendentals=2 * L * N,
            bytes_accessed=4 * (L * N * (D8 + 2 * D2) + 2 * D12 + L * 2 * N)),
    )(g, m, m2, w_all)
    return out[:, 0, :], out[:, 1, :]


# ----------------------------------------------------------------------------
# Full BiDAF forward
# ----------------------------------------------------------------------------
def bidaf_forward(params, context, quary):
    c = bilstm(context, params["lstm_ctx"])
    q = bilstm(quary, params["lstm_ctx"])
    g = att_layer_pallas(c, q,
                         params["attC_w"], params["attQ_w"], params["attCQ_w"],
                         params["attC_b"], params["attQ_b"], params["attCQ_b"])
    x = bilstm(g, params["lstm_m1"])
    m = bilstm(x, params["lstm_m2"])
    m2 = bilstm(m, params["lstm_out"])
    p1, p2 = heads_pallas(g, m, m2,
                          params["p1g_w"], params["p1m_w"],
                          params["p2g_w"], params["p2m_w"],
                          params["p1g_b"], params["p1m_b"],
                          params["p2g_b"], params["p2m_b"])
    return p1, p2


# ----------------------------------------------------------------------------
# Pure-JAX reference (correctness check for the Pallas kernels)
# ----------------------------------------------------------------------------
def bidaf_reference(params, context, quary):
    c = bilstm(context, params["lstm_ctx"])
    q = bilstm(quary, params["lstm_ctx"])
    sc = c @ params["attC_w"] + params["attC_b"]                       # (L, N)
    sq = q @ params["attQ_w"] + params["attQ_b"]                       # (L, Nq)
    cross = jnp.einsum("lnh,lmh->lnm", c * params["attCQ_w"], q) + params["attCQ_b"]
    S = cross + sc[..., None] + sq[:, None, :]                         # (L, N, Nq)
    a = jax.nn.softmax(S, axis=2)
    c2q = jnp.einsum("lnm,lmh->lnh", a, q)
    b = jax.nn.softmax(jnp.max(S, axis=2), axis=1)
    q2c = jnp.einsum("ln,lnh->lh", b, c)[:, None, :]
    g = jnp.concatenate([c, c2q, c * c2q, c * jnp.broadcast_to(q2c, c.shape)], axis=2)
    x = bilstm(g, params["lstm_m1"])
    m = bilstm(x, params["lstm_m2"])
    m2 = bilstm(m, params["lstm_out"])
    l1 = g @ params["p1g_w"] + params["p1g_b"] + m @ params["p1m_w"] + params["p1m_b"]
    l2 = g @ params["p2g_w"] + params["p2g_b"] + m2 @ params["p2m_w"] + params["p2m_b"]
    return jax.nn.softmax(l1, axis=1), jax.nn.softmax(l2, axis=1)


# ----------------------------------------------------------------------------
# Deterministic parameter init (synthetic, PyTorch-like uniform(-1/sqrt(H), ..))
# ----------------------------------------------------------------------------
def init_lstm(key, input_size, hidden, num_layers=2):
    s = 1.0 / (hidden ** 0.5)
    layers = []
    for layer in range(num_layers):
        in_sz = input_size if layer == 0 else 2 * hidden
        dirs = {}
        for d in ("fwd", "bwd"):
            key, k1, k2, k3, k4 = jax.random.split(key, 5)
            dirs[d] = (
                jax.random.uniform(k1, (4 * hidden, in_sz), jnp.float32, -s, s),
                jax.random.uniform(k2, (4 * hidden, hidden), jnp.float32, -s, s),
                jax.random.uniform(k3, (4 * hidden,), jnp.float32, -s, s),
                jax.random.uniform(k4, (4 * hidden,), jnp.float32, -s, s),
            )
        layers.append(dirs)
    return key, layers


def init_linear(key, in_features):
    s = 1.0 / (in_features ** 0.5)
    key, kw, kb = jax.random.split(key, 3)
    w = jax.random.uniform(kw, (in_features,), jnp.float32, -s, s)
    b = jax.random.uniform(kb, (), jnp.float32, -s, s)
    return key, w, b


def init_params(key, d_emb, d_h, num_layers=2):
    params = {}
    key, params["lstm_ctx"] = init_lstm(key, d_emb, d_h, num_layers)
    key, params["attC_w"], params["attC_b"] = init_linear(key, 2 * d_h)
    key, params["attQ_w"], params["attQ_b"] = init_linear(key, 2 * d_h)
    key, params["attCQ_w"], params["attCQ_b"] = init_linear(key, 2 * d_h)
    key, params["lstm_m1"] = init_lstm(key, 8 * d_h, d_h, num_layers)
    key, params["lstm_m2"] = init_lstm(key, 2 * d_h, d_h, num_layers)
    key, params["lstm_out"] = init_lstm(key, 2 * d_h, d_h, num_layers)
    key, params["p1g_w"], params["p1g_b"] = init_linear(key, 8 * d_h)
    key, params["p1m_w"], params["p1m_b"] = init_linear(key, 2 * d_h)
    key, params["p2g_w"], params["p2g_b"] = init_linear(key, 8 * d_h)
    key, params["p2m_w"], params["p2m_b"] = init_linear(key, 2 * d_h)
    return key, params


if __name__ == "__main__":
    D_emb, D_H = 16, 16          # 2H = 32, 8H = 128
    L, N, Nq = 8, 8, 16          # (seq "batch", context positions, query positions)

    key = jax.random.PRNGKey(0)
    key, params = init_params(key, D_emb, D_H)
    key, kc, kq = jax.random.split(key, 3)
    context = jax.random.normal(kc, (L, N, D_emb), jnp.float32)
    quary = jax.random.normal(kq, (L, Nq, D_emb), jnp.float32)

    fwd = jax.jit(bidaf_forward)
    p1, p2 = fwd(params, context, quary)
    jax.block_until_ready((p1, p2))

    # correctness check against pure-JAX reference; tolerances account for
    # pl.reciprocal(..., approx=True) inside the attention softmaxes.
    r1, r2 = jax.jit(bidaf_reference)(params, context, quary)
    jax.block_until_ready((r1, r2))
    assert p1.shape == (L, N) and p2.shape == (L, N)
    assert jnp.allclose(p1, r1, rtol=1e-2, atol=5e-3), "p1 mismatch"
    assert jnp.allclose(p2, r2, rtol=1e-2, atol=5e-3), "p2 mismatch"
    assert jnp.allclose(jnp.sum(p1, axis=1), 1.0, atol=5e-3)
    assert jnp.allclose(jnp.sum(p2, axis=1), 1.0, atol=5e-3)

    print("KERNEL_OK")
</pallas_src>

<mosaic_0001>
module attributes {stable_mosaic.version = 11 : i64} {
  func.func @_att_kernel(%arg0: i32, %arg1: memref<2x8x32xf32, #tpu.memory_space<vmem>>, %arg2: memref<2x16x32xf32, #tpu.memory_space<vmem>>, %arg3: memref<3x32xf32, #tpu.memory_space<vmem>>, %arg4: memref<1xf32, #tpu.memory_space<smem>>, %arg5: memref<2x8x128xf32, #tpu.memory_space<vmem>>) attributes {dimension_semantics = [#tpu.dimension_semantics<parallel>], iteration_bounds = array<i64: 4>, scalar_prefetch = 0 : i64, scratch_operands = 0 : i64, tpu.core_type = #tpu.core_type<tc>, window_params = [{transform_indices = @transform_0, window_bounds = array<i64: 2, 8, 32>}, {transform_indices = @transform_1, window_bounds = array<i64: 2, 16, 32>}, {pipeline_mode = #tpu.pipeline_mode<synchronous>, transform_indices = @transform_2, window_bounds = array<i64: 3, 32>}, {transform_indices = @transform_3, window_bounds = array<i64: 1>}, {transform_indices = @transform_4, window_bounds = array<i64: 2, 8, 128>}]} {
    %c0 = arith.constant 0 : index
    %c0_0 = arith.constant 0 : index
    %c0_1 = arith.constant 0 : index
    %0 = vector.load %arg1[%c0, %c0_0, %c0_1] : memref<2x8x32xf32, #tpu.memory_space<vmem>>, vector<2x8x32xf32>
    %c0_2 = arith.constant 0 : index
    %c0_3 = arith.constant 0 : index
    %c0_4 = arith.constant 0 : index
    %1 = vector.load %arg2[%c0_2, %c0_3, %c0_4] : memref<2x16x32xf32, #tpu.memory_space<vmem>>, vector<2x16x32xf32>
    %c0_5 = arith.constant 0 : index
    %c0_6 = arith.constant 0 : index
    %2 = vector.load %arg3[%c0_5, %c0_6] : memref<3x32xf32, #tpu.memory_space<vmem>>, vector<1x32xf32>
    %c1 = arith.constant 1 : index
    %c0_7 = arith.constant 0 : index
    %3 = vector.load %arg3[%c1, %c0_7] : memref<3x32xf32, #tpu.memory_space<vmem>>, vector<1x32xf32>
    %c2 = arith.constant 2 : index
    %c0_8 = arith.constant 0 : index
    %4 = vector.load %arg3[%c2, %c0_8] : memref<3x32xf32, #tpu.memory_space<vmem>>, vector<1x32xf32>
    %c0_9 = arith.constant 0 : index
    %5 = memref.load %arg4[%c0_9] : memref<1xf32, #tpu.memory_space<smem>>
    %6 = vector.shape_cast %4 : vector<1x32xf32> to vector<1x1x32xf32>
    %7 = vector.broadcast %6 : vector<1x1x32xf32> to vector<2x8x32xf32>
    %8 = arith.mulf %0, %7 : vector<2x8x32xf32>
    "tpu.trace_start"() <{level = 10 : i32, message = "lnh,lmh->lnm"}> : () -> ()
    %cst = arith.constant dense<0.000000e+00> : vector<2x8x16xf32>
    %9 = tpu.matmul %8, %1, %cst {dimension_numbers = #tpu.dot_dimension_numbers<[2], [2], [1], [1], [0, 0, 0, 1, 1, 1], [0], [0]>} : vector<2x8x32xf32>, vector<2x16x32xf32>, vector<2x8x16xf32> -> vector<2x8x16xf32>
    "tpu.trace_stop"() : () -> ()
    %10 = vector.shape_cast %2 : vector<1x32xf32> to vector<1x1x32xf32>
    %11 = vector.broadcast %10 : vector<1x1x32xf32> to vector<2x8x32xf32>
    %12 = arith.mulf %0, %11 : vector<2x8x32xf32>
    %cst_10 = arith.constant dense<0.000000e+00> : vector<2x8xf32>
    %13 = vector.multi_reduction <add>, %12, %cst_10 [2] : vector<2x8x32xf32> to vector<2x8xf32>
    %14 = vector.shape_cast %13 : vector<2x8xf32> to vector<2x8x1xf32>
    %15 = vector.shape_cast %3 : vector<1x32xf32> to vector<1x1x32xf32>
    %16 = vector.broadcast %15 : vector<1x1x32xf32> to vector<2x16x32xf32>
    %17 = arith.mulf %1, %16 : vector<2x16x32xf32>
    %cst_11 = arith.constant dense<0.000000e+00> : vector<2x16xf32>
    %18 = vector.multi_reduction <add>, %17, %cst_11 [2] : vector<2x16x32xf32> to vector<2x16xf32>
    %19 = vector.shape_cast %18 : vector<2x16xf32> to vector<2x1x16xf32>
    %20 = vector.broadcast %14 : vector<2x8x1xf32> to vector<2x8x16xf32>
    %21 = arith.addf %9, %20 : vector<2x8x16xf32>
    %22 = vector.broadcast %19 : vector<2x1x16xf32> to vector<2x8x16xf32>
    %23 = arith.addf %21, %22 : vector<2x8x16xf32>
    %24 = vector.broadcast %5 : f32 to vector<2x8x16xf32>
    %25 = arith.addf %23, %24 : vector<2x8x16xf32>
    %cst_12 = arith.constant dense<0xFF800000> : vector<2x8xf32>
    %26 = vector.multi_reduction <maximumf>, %25, %cst_12 [2] : vector<2x8x16xf32> to vector<2x8xf32>
    %27 = vector.shape_cast %26 : vector<2x8xf32> to vector<2x8x1xf32>
    %28 = vector.broadcast %27 : vector<2x8x1xf32> to vector<2x8x16xf32>
    %29 = arith.subf %25, %28 : vector<2x8x16xf32>
    %30 = math.exp %29 : vector<2x8x16xf32>
    %cst_13 = arith.constant dense<0.000000e+00> : vector<2x8xf32>
    %31 = vector.multi_reduction <add>, %30, %cst_13 [2] : vector<2x8x16xf32> to vector<2x8xf32>
    %32 = vector.shape_cast %31 : vector<2x8xf32> to vector<2x8x1xf32>
    %33 = tpu.reciprocal %32 {approx = true} : vector<2x8x1xf32> -> vector<2x8x1xf32>
    %34 = vector.broadcast %33 : vector<2x8x1xf32> to vector<2x8x16xf32>
    %35 = arith.mulf %30, %34 : vector<2x8x16xf32>
    "tpu.trace_start"() <{level = 10 : i32, message = "lnm,lmh->lnh"}> : () -> ()
    %cst_14 = arith.constant dense<0.000000e+00> : vector<2x8x32xf32>
    %36 = tpu.matmul %35, %1, %cst_14 {dimension_numbers = #tpu.dot_dimension_numbers<[2], [1], [1], [2], [0, 0, 0, 1, 1, 2], [0], [0]>} : vector<2x8x16xf32>, vector<2x16x32xf32>, vector<2x8x32xf32> -> vector<2x8x32xf32>
    "tpu.trace_stop"() : () -> ()
    %cst_15 = arith.constant dense<0xFF800000> : vector<2x1xf32>
    %37 = vector.multi_reduction <maximumf>, %27, %cst_15 [1] : vector<2x8x1xf32> to vector<2x1xf32>
    %38 = vector.shape_cast %37 : vector<2x1xf32> to vector<2x1x1xf32>
    %39 = vector.broadcast %38 : vector<2x1x1xf32> to vector<2x8x1xf32>
    %40 = arith.subf %27, %39 : vector<2x8x1xf32>
    %41 = math.exp %40 : vector<2x8x1xf32>
    %cst_16 = arith.constant dense<0.000000e+00> : vector<2x1xf32>
    %42 = vector.multi_reduction <add>, %41, %cst_16 [1] : vector<2x8x1xf32> to vector<2x1xf32>
    %43 = vector.shape_cast %42 : vector<2x1xf32> to vector<2x1x1xf32>
    %44 = tpu.reciprocal %43 {approx = true} : vector<2x1x1xf32> -> vector<2x1x1xf32>
    %45 = vector.broadcast %44 : vector<2x1x1xf32> to vector<2x8x1xf32>
    %46 = arith.mulf %41, %45 : vector<2x8x1xf32>
    %47 = vector.broadcast %46 : vector<2x8x1xf32> to vector<2x8x32xf32>
    %48 = arith.mulf %47, %0 : vector<2x8x32xf32>
    %cst_17 = arith.constant dense<0.000000e+00> : vector<2x32xf32>
    %49 = vector.multi_reduction <add>, %48, %cst_17 [1] : vector<2x8x32xf32> to vector<2x32xf32>
    %50 = vector.shape_cast %49 : vector<2x32xf32> to vector<2x1x32xf32>
    %51 = arith.mulf %0, %36 : vector<2x8x32xf32>
    %52 = vector.broadcast %50 : vector<2x1x32xf32> to vector<2x8x32xf32>
    %53 = arith.mulf %0, %52 : vector<2x8x32xf32>
    %54 = tpu.concatenate %0, %36, %51, %53 in 2 : vector<2x8x32xf32>, vector<2x8x32xf32>, vector<2x8x32xf32>, vector<2x8x32xf32> -> vector<2x8x128xf32>
    %c0_18 = arith.constant 0 : index
    %c0_19 = arith.constant 0 : index
    %c0_20 = arith.constant 0 : index
    %55 = vector.load %arg5[%c0_18, %c0_19, %c0_20] : memref<2x8x128xf32, #tpu.memory_space<vmem>>, vector<2x8x128xf32>
    tpu.vector_store %arg5[%c0_18, %c0_19, %c0_20], %54 {strides = array<i32>} : memref<2x8x128xf32, #tpu.memory_space<vmem>>, vector<2x8x128xf32>,
    return
  }
  func.func @transform_0(%arg0: i32) -> (i32, i32, i32) {
    %c0_i32 = arith.constant 0 : i32
    %c0_i32_0 = arith.constant 0 : i32
    %c0_i32_1 = arith.constant 0 : i32
    return %arg0, %c0_i32, %c0_i32_0 : i32, i32, i32
  }
  func.func @transform_1(%arg0: i32) -> (i32, i32, i32) {
    %c0_i32 = arith.constant 0 : i32
    %c0_i32_0 = arith.constant 0 : i32
    %c0_i32_1 = arith.constant 0 : i32
    return %arg0, %c0_i32, %c0_i32_0 : i32, i32, i32
  }
  func.func @transform_2(%arg0: i32) -> (i32, i32) {
    %c0_i32 = arith.constant 0 : i32
    %c0_i32_0 = arith.constant 0 : i32
    %c0_i32_1 = arith.constant 0 : i32
    return %c0_i32, %c0_i32_0 : i32, i32
  }
  func.func @transform_3(%arg0: i32) -> i32 {
    %c0_i32 = arith.constant 0 : i32
    %c0_i32_0 = arith.constant 0 : i32
    return %c0_i32 : i32
  }
  func.func @transform_4(%arg0: i32) -> (i32, i32, i32) {
    %c0_i32 = arith.constant 0 : i32
    %c0_i32_0 = arith.constant 0 : i32
    %c0_i32_1 = arith.constant 0 : i32
    return %arg0, %c0_i32, %c0_i32_0 : i32, i32, i32
  }
}

module attributes {stable_mosaic.version = 11 : i64} {
  func.func @_head_kernel(%arg0: i32, %arg1: memref<2x8x128xf32, #tpu.memory_space<vmem>>, %arg2: memref<2x8x32xf32, #tpu.memory_space<vmem>>, %arg3: memref<2x8x32xf32, #tpu.memory_space<vmem>>, %arg4: memref<2x192xf32, #tpu.memory_space<vmem>>, %arg5: memref<2x2x8xf32, #tpu.memory_space<vmem>>) attributes {dimension_semantics = [#tpu.dimension_semantics<parallel>], iteration_bounds = array<i64: 4>, scalar_prefetch = 0 : i64, scratch_operands = 0 : i64, tpu.core_type = #tpu.core_type<tc>, window_params = [{transform_indices = @transform_0, window_bounds = array<i64: 2, 8, 128>}, {transform_indices = @transform_1, window_bounds = array<i64: 2, 8, 32>}, {transform_indices = @transform_2, window_bounds = array<i64: 2, 8, 32>}, {pipeline_mode = #tpu.pipeline_mode<synchronous>, transform_indices = @transform_3, window_bounds = array<i64: 2, 192>}, {transform_indices = @transform_4, window_bounds = array<i64: 2, 2, 8>}]} {
    %c0 = arith.constant 0 : index
    %c0_0 = arith.constant 0 : index
    %c0_1 = arith.constant 0 : index
    %0 = vector.load %arg1[%c0, %c0_0, %c0_1] : memref<2x8x128xf32, #tpu.memory_space<vmem>>, vector<2x8x128xf32>
    %c0_2 = arith.constant 0 : index
    %c0_3 = arith.constant 0 : index
    %c0_4 = arith.constant 0 : index
    %1 = vector.load %arg2[%c0_2, %c0_3, %c0_4] : memref<2x8x32xf32, #tpu.memory_space<vmem>>, vector<2x8x32xf32>
    %c0_5 = arith.constant 0 : index
    %c0_6 = arith.constant 0 : index
    %c0_7 = arith.constant 0 : index
    %2 = vector.load %arg3[%c0_5, %c0_6, %c0_7] : memref<2x8x32xf32, #tpu.memory_space<vmem>>, vector<2x8x32xf32>
    %3 = tpu.concatenate %0, %1, %2 in 2 : vector<2x8x128xf32>, vector<2x8x32xf32>, vector<2x8x32xf32> -> vector<2x8x192xf32>
    %c0_8 = arith.constant 0 : index
    %c0_9 = arith.constant 0 : index
    %4 = vector.load %arg4[%c0_8, %c0_9] : memref<2x192xf32, #tpu.memory_space<vmem>>, vector<2x192xf32>
    %5 = vector.shape_cast %4 : vector<2x192xf32> to vector<1x2x192xf32>
    %6 = vector.shape_cast %5 : vector<1x2x192xf32> to vector<1x2x192xf32>
    %7 = vector.broadcast %6 : vector<1x2x192xf32> to vector<2x2x192xf32>
    "tpu.trace_start"() <{level = 10 : i32, message = "lhf,lnf->lhn"}> : () -> ()
    %cst = arith.constant dense<0.000000e+00> : vector<2x2x8xf32>
    %8 = tpu.matmul %7, %3, %cst {dimension_numbers = #tpu.dot_dimension_numbers<[2], [2], [1], [1], [0, 0, 0, 1, 1, 1], [0], [0]>} : vector<2x2x192xf32>, vector<2x8x192xf32>, vector<2x2x8xf32> -> vector<2x2x8xf32>
    "tpu.trace_stop"() : () -> ()
    %cst_10 = arith.constant dense<0xFF800000> : vector<2x2xf32>
    %9 = vector.multi_reduction <maximumf>, %8, %cst_10 [2] : vector<2x2x8xf32> to vector<2x2xf32>
    %10 = vector.shape_cast %9 : vector<2x2xf32> to vector<2x2x1xf32>
    %11 = vector.broadcast %10 : vector<2x2x1xf32> to vector<2x2x8xf32>
    %12 = arith.subf %8, %11 : vector<2x2x8xf32>
    %13 = math.exp %12 : vector<2x2x8xf32>
    %cst_11 = arith.constant dense<0.000000e+00> : vector<2x2xf32>
    %14 = vector.multi_reduction <add>, %13, %cst_11 [2] : vector<2x2x8xf32> to vector<2x2xf32>
    %15 = vector.shape_cast %14 : vector<2x2xf32> to vector<2x2x1xf32>
    %16 = vector.broadcast %15 : vector<2x2x1xf32> to vector<2x2x8xf32>
    %17 = arith.divf %13, %16 : vector<2x2x8xf32>
    %c0_12 = arith.constant 0 : index
    %c0_13 = arith.constant 0 : index
    %c0_14 = arith.constant 0 : index
    %18 = vector.load %arg5[%c0_12, %c0_13, %c0_14] : memref<2x2x8xf32, #tpu.memory_space<vmem>>, vector<2x2x8xf32>
    tpu.vector_store %arg5[%c0_12, %c0_13, %c0_14], %17 {strides = array<i32>} : memref<2x2x8xf32, #tpu.memory_space<vmem>>, vector<2x2x8xf32>,
    return
  }
  func.func @transform_0(%arg0: i32) -> (i32, i32, i32) {
    %c0_i32 = arith.constant 0 : i32
    %c0_i32_0 = arith.constant 0 : i32
    %c0_i32_1 = arith.constant 0 : i32
    return %arg0, %c0_i32, %c0_i32_0 : i32, i32, i32
  }
  func.func @transform_1(%arg0: i32) -> (i32, i32, i32) {
    %c0_i32 = arith.constant 0 : i32
    %c0_i32_0 = arith.constant 0 : i32
    %c0_i32_1 = arith.constant 0 : i32
    return %arg0, %c0_i32, %c0_i32_0 : i32, i32, i32
  }
  func.func @transform_2(%arg0: i32) -> (i32, i32, i32) {
    %c0_i32 = arith.constant 0 : i32
    %c0_i32_0 = arith.constant 0 : i32
    %c0_i32_1 = arith.constant 0 : i32
    return %arg0, %c0_i32, %c0_i32_0 : i32, i32, i32
  }
  func.func @transform_3(%arg0: i32) -> (i32, i32) {
    %c0_i32 = arith.constant 0 : i32
    %c0_i32_0 = arith.constant 0 : i32
    %c0_i32_1 = arith.constant 0 : i32
    return %c0_i32, %c0_i32_0 : i32, i32
  }
  func.func @transform_4(%arg0: i32) -> (i32, i32, i32) {
    %c0_i32 = arith.constant 0 : i32
    %c0_i32_0 = arith.constant 0 : i32
    %c0_i32_1 = arith.constant 0 : i32
    return %arg0, %c0_i32, %c0_i32_0 : i32, i32, i32
  }
}

</mosaic_0001>

<bundles_post_ra>
// kernel: custom-call.1
= control target key start
LH: loop header
LB: loop body
LE: loop exit
PB: predicated region body
PF: predicated region fallthrough
CT: control target
= control target key end

     0   :  { %s6_s0 = inlined_call_operand.vmem [shape: f32[2,8,16], index: 0, kind: output, shape index: {}]  }

// kernel: custom-call
= control target key start
LH: loop header
LB: loop body
LE: loop exit
PB: predicated region body
PF: predicated region fallthrough
CT: control target
= control target key end

     0   :  { %s6_s0 = inlined_call_operand.vmem [shape: bf16[2,8,16], index: 0, kind: output, shape index: {}]  }

// kernel: custom-call.5
= control target key start
LH: loop header
LB: loop body
LE: loop exit
PB: predicated region body
PF: predicated region fallthrough
CT: control target
= control target key end

     0   :  { %s6_s0 = inlined_call_operand.vmem [shape: f32[2,16,16], index: 0, kind: output, shape index: {}]  }

// kernel: custom-call.4
= control target key start
LH: loop header
LB: loop body
LE: loop exit
PB: predicated region body
PF: predicated region fallthrough
CT: control target
= control target key end

     0   :  { %s6_s0 = inlined_call_operand.vmem [shape: bf16[2,16,16], index: 0, kind: output, shape index: {}]  }

// kernel: custom-call.20
= control target key start
LH: loop header
LB: loop body
LE: loop exit
PB: predicated region body
PF: predicated region fallthrough
CT: control target
= control target key end

     0   :  { %s6_s0 = inlined_call_operand.vmem [shape: f32[8,2,16,16], index: 0, kind: output, shape index: {}]  }

// kernel: bidaf_forward.3
= control target key start
LH: loop header
LB: loop body
LE: loop exit
PB: predicated region body
PF: predicated region fallthrough
CT: control target
= control target key end

     0   :  { %s564_s15 = smov 0   ;;  %s600_s0 = inlined_call_operand.vmem [shape: f32[8,8,128], index: 0, kind: input, shape index: {}]   ;;  %s601_s1 = inlined_call_operand.vmem [shape: f32[8,8,32], index: 1, kind: input, shape index: {}]   ;;  %s602_s2 = inlined_call_operand.vmem [shape: f32[8,8,32], index: 2, kind: input, shape index: {}]   ;;  %s603_s3 = inlined_call_operand.vmem [shape: f32[2,192], index: 3, kind: input, shape index: {}]   ;;  %s604_s4 = inlined_call_operand.vmem [shape: f32[8,2,8], index: 4, kind: output, shape index: {}]  }
   0x1 LB: > { %s494_s16 = sadd.s32 4294967295, %s536_s15   ;;  %p498_p0 = scmp.ge.s32.totalorder %s536_s15, 1  ;;  %s536_s15 = sphi %s564_s15, %s14_s15  }
   0x2   : > { %p185_p1 = scmp.lt.s32.totalorder %s536_s15, 5 }
   0x4   : > { %p186_p2 = pnand %p498_p0, %p185_p1 }
   0x5   : > { %s499_s17 = sshll.u32 (!%p186_p2), %s494_s16, 1  ;;  %s538_s22 = smov (!%p186_p2), 32  }
   0x6   : > { %189 = sbr.rel (%p186_p2) target bundleno = 543 (0x21f), region = 36  ;;  %p222_p3 = scmp.lt.s32.totalorder (!%p186_p2), %s499_s17, 7 }
   0xb   : > { %s606_s17 = smov (!%p222_p3, %s499_s17), 7  ;;  %v262_v2 = vld [vmem:[%s603_s3] sm:$0xf]  ;;  %vm259_vm0 = vcmask 261120   ;;  %vm268_vm1 = vcmask 523264   ;;  %vm363_vm2 = vcmask 58368  }
   0xc   : > { %s500_s18 = sshll.u32 %s606_s17, 3  ;;  %264 = vst [vmem:[#allocation1] ss:$4 sm:$0xff] %v262_v2  ;;  %s506_s5 = sshll.u32 %s606_s17, 1 }
   0xd   : > { %s237_s21 = scalar_lea.vmem %s602_s2, %s500_s18  ;;  %s225_s27 = scalar_lea.vmem %s600_s0, %s500_s18 }
   0xe   : > { %v250_v0 = vld [vmem:[%s237_s21 + $0x8] sm:$0xff]  ;;  %v249_v1 = vld [vmem:[%s237_s21] sm:$0xff]  ;;  %s231_s30 = scalar_lea.vmem %s601_s1, %s500_s18  ;;  %s243_s8 = scalar_lea.vmem %s604_s4, %s506_s5 }
   0xf   : > { %255 = vrot.lane.b32.xlu0 %v250_v0, %s538_s22  ;;  %v245_v5 = vld [vmem:[%s225_s27] sm:$0xff]  ;;  %v246_v6 = vld [vmem:[%s225_s27 + $0x8] sm:$0xff] }
  0x10   : > { %289 = vmatpush.xpose.msra.mxu0 %v245_v5  ;;  %338 = vmatpush.xpose.msra.mxu2 %v246_v6  ;;  %v248_v8 = vld [vmem:[%s231_s30 + $0x8] sm:$0xff]  ;;  %v247_v12 = vld [vmem:[%s231_s30] sm:$0xff] }
  0x13   : > { %v265_v3 = vld.sshfl [vmem:[#allocation1] sm:$0xff pattern:$0x73625140]  ;;  %v266_v4 = vld.sshfl [vmem:[#allocation1 + $0x8] sm:$0xff pattern:$0x73625140] }
  0x14   : > { %314 = vst [vmem:[#allocation1] ss:$4 sm:$0xff] %v262_v2  ;;  %290 = vmatmul.f32.vlgmr.msra.gmra.mxu0 %v265_v3 }
  0x17   : > { %253 = vrot.lane.b32.xlu0 %v249_v1, %s538_s22 }
  0x1b   : > { %v315_v7 = vld.sshfl [vmem:[#allocation1] sm:$0xff pattern:$0x73625140]  ;;  %v316_v11 = vld.sshfl [vmem:[#allocation1 + $0x8] sm:$0xff pattern:$0x73625140] }
  0x1c   : > { %339 = vmatmul.f32.vlgmr.msra.gmra.mxu2 %v315_v7 }
  0x81   : > { %v256_v9 = vpop.permute.xlu0 %255 }
  0x82   : > { %v261_v10 = vsel %vm259_vm0, %v248_v8, %v256_v9 }
  0x83   : > { %509 = vmatpush.xpose.msk.msra.mxu3 %vm268_vm1, %v261_v10 }
  0x86   : > { %510 = vmatmul.msk.f32.vlgmr.msra.gmra.mxu3 %vm268_vm1, %v316_v11 }
  0x89   : > { %v254_v13 = vpop.permute.xlu0 %253 }
  0x8a   : > { %v260_v14 = vsel %vm259_vm0, %v247_v12, %v254_v13 }
  0x8b   : > { %507 = vmatpush.xpose.msk.msra.mxu1 %vm268_vm1, %v260_v14 }
  0x8e   : > { %508 = vmatmul.msk.f32.vlgmr.msra.gmra.mxu1 %vm268_vm1, %v266_v4 }
  0x91   : > { %v291_v15 = vpop.f32.mrf.mxu0 }
  0x9f   : > { %v340_v18 = vpop.f32.mrf.mxu2 }
 0x109   : > { %v360_v19 = vpop.f32.mrf.mxu3 }
 0x10a   : > { %v361_v21 = vadd.f32 %v360_v19, %v340_v18 }
 0x10b   : > { %v311_v16 = vpop.f32.mrf.mxu1 }
 0x10c   : > { %v312_v17 = vadd.f32 %v311_v16, %v291_v15  ;;  %v367_v22 = vsel %vm363_vm2, %v361_v21, -inf }
 0x10e   : > { %v364_v20 = vsel %vm363_vm2, %v312_v17, -inf }
 0x10f   : > { %365 = vmax.xlane.f32.xlu1 %v364_v20 }
 0x117   : > { %368 = vmax.xlane.f32.xlu1 %v367_v22 }
 0x182   : > { %v366_v23 = vpop.xlane.xlu1 %365 }
 0x183   : > { %v370_v24 = vsub.f32 %v312_v17, %v366_v23 }
 0x185   : > { %v372_v25 = vmul.f32 1.442695, %v370_v24 }
 0x187   : > { %522 = vpow2.f32 %v372_v25 }
 0x18a   : > { %v369_v26 = vpop.xlane.xlu1 %368 }
 0x18b   : > { %v371_v27 = vsub.f32 %v361_v21, %v369_v26 }
 0x18d   : > { %v523_v28 = vpop.eup %522  ;;  %v374_v29 = vmul.f32 1.442695, %v371_v27 }
 0x18e   : > { %v376_v30 = vsel %vm363_vm2, %v523_v28, 0.0 }
 0x18f   : > { %524 = vpow2.f32 %v374_v29  ;;  %377 = vadd.xlane.f32.xlu2 %v376_v30 }
 0x195   : > { %v525_v31 = vpop.eup %524 }
 0x196   : > { %v379_v32 = vsel %vm363_vm2, %v525_v31, 0.0 }
 0x197   : > { %380 = vadd.xlane.f32.xlu2 %v379_v32 }
 0x202   : > { %v378_v33 = vpop.xlane.xlu2 %377 }
 0x203   : > { %526 = vrcp.f32 %v378_v33  ;;  %v393_v38 = vand.u32 2147483648, %v378_v33  ;;  %v391_v40 = vand.u32 2147483647, %v378_v33  ;;  %vm387_vm4 = vweird.f32 %v378_v33 }
 0x205   : > { %v394_v43 = vor.u32 1.1754944e-38, %v393_v38  ;;  %vm392_vm6 = vcmp.eq.f32.partialorder %v391_v40, 8.507059e+37 }
 0x209   : > { %v527_v34 = vpop.eup %526 }
 0x20a   : > { %v383_v35 = vmul.f32 %v527_v34, %v378_v33  ;;  %v381_v36 = vpop.xlane.xlu2 %380  ;;  %vm388_vm3 = vweird.f32 %v527_v34 }
 0x20b   : > { %528 = vrcp.f32 %v381_v36  ;;  %vm389_vm5 = vmor %vm387_vm4, %vm388_vm3  ;;  %v408_v49 = vand.u32 2147483648, %v381_v36  ;;  %v406_v51 = vand.u32 2147483647, %v381_v36  ;;  %vm402_vm8 = vweird.f32 %v381_v36 }
 0x20c   : > { %v384_v37 = vsub.f32 1.0, %v383_v35 }
 0x20d   : > { %v409_v53 = vor.u32 1.1754944e-38, %v408_v49  ;;  %vm407_vm10 = vcmp.eq.f32.partialorder %v406_v51, 8.507059e+37 }
 0x20e   : > { %v385_v39 = vmul.f32 %v527_v34, %v384_v37 }
 0x210   : > { %v386_v41 = vadd.f32 %v527_v34, %v385_v39 }
 0x211   : > { %v529_v42 = vpop.eup %528 }
 0x212   : > { %v390_v44 = vsel %vm389_vm5, %v527_v34, %v386_v41  ;;  %v398_v45 = vmul.f32 %v529_v42, %v381_v36  ;;  %vm403_vm7 = vweird.f32 %v529_v42 }
 0x213   : > { %v395_v46 = vsel %vm392_vm6, %v394_v43, %v390_v44  ;;  %vm404_vm9 = vmor %vm402_vm8, %vm403_vm7 }
 0x214   : > { %v396_v47 = vmul.f32 %v523_v28, %v395_v46  ;;  %v399_v48 = vsub.f32 1.0, %v398_v45 }
 0x216   : > { %412 = vst.msk [vmem:[%s243_s8] sm:$0x3] %vm363_vm2, %v396_v47  ;;  %v400_v50 = vmul.f32 %v529_v42, %v399_v48 }
 0x218   : > { %v401_v52 = vadd.f32 %v529_v42, %v400_v50 }
 0x21a   : > { %v405_v54 = vsel %vm404_vm9, %v529_v42, %v401_v52 }
 0x21b   : > { %v410_v55 = vsel %vm407_vm10, %v409_v53, %v405_v54 }
 0x21c   : > { %v411_v56 = vmul.f32 %v525_v31, %v410_v55 }
 0x21e   : > { %413 = vst.msk [vmem:[%s243_s8 + $0x2] sm:$0x3] %vm363_vm2, %v411_v56 }
 0x21f PF: > { %s14_s15 = sadd.s32 1, %s536_s15  }
 0x220   : > { %p11_p4 = scmp.ge.s32.totalorder %s14_s15, 6  }
 0x222   :  { %13 = sbr.rel (!%p11_p4) target bundleno = 1 (0x1), region = 72 }

// kernel: bidaf_forward.2
= control target key start
LH: loop header
LB: loop body
LE: loop exit
PB: predicated region body
PF: predicated region fallthrough
CT: control target
= control target key end

     0   :  { %s681_s17 = smov 0   ;;  %s756_s0 = inlined_call_operand.vmem [shape: f32[8,8,32], index: 0, kind: input, shape index: {}]   ;;  %s757_s1 = inlined_call_operand.vmem [shape: f32[8,16,32], index: 1, kind: input, shape index: {}]   ;;  %s758_s2 = inlined_call_operand.vmem [shape: f32[3,32], index: 2, kind: input, shape index: {}]   ;;  %s759_s3 = inlined_call_operand.<no memory space> [shape: f32[1], index: 3, kind: input, shape index: {}]   ;;  %s760_s4 = inlined_call_operand.vmem [shape: f32[8,8,128], index: 4, kind: output, shape index: {}]  }
   0x1   :  { %9 = sst [smem:[#allocation2]] %s759_s3 }
   0x2 LB: > { %s589_s18 = sadd.s32 4294967295, %s648_s17   ;;  %p593_p0 = scmp.ge.s32.totalorder %s648_s17, 1  ;;  %s648_s17 = sphi %s681_s17, %s15_s17  }
   0x3   : > { %p176_p1 = scmp.lt.s32.totalorder %s648_s17, 5 }
   0x5   : > { %p177_p2 = pnand %p593_p0, %p176_p1 }
   0x6   : > { %s594_s19 = sshll.u32 (!%p177_p2), %s589_s18, 1  ;;  %s236_s7 = sld [smem:[#allocation2]] (!%p177_p2) }
   0x7   : > { %180 = sbr.rel (%p177_p2) target bundleno = 668 (0x29c), region = 36  ;;  %p209_p3 = scmp.lt.s32.totalorder (!%p177_p2), %s594_s19, 7 }
   0x8   : > { %s650_s8 = smov (!%p177_p2), 32   ;;  %s651_s9 = smov (!%p177_p2), 64  }
   0x9   : > { %s652_s10 = smov (!%p177_p2), 96  }
   0xc   : > { %s762_s19 = smov (!%p209_p3, %s594_s19), 7  ;;  %v625_v0 = vld [vmem:[%s758_s2] ss:$0 sm:$0xff]  ;;  %vm243_vm0 = vcmask 261120   ;;  %v623_v1 = vld [vmem:[%s758_s2 + $0x1] ss:$0 sm:$0xff]  ;;  %v329_v23 = vlaneseq  ;;  %v361_v42 = vstv %s236_s7 }
   0xd   : > { %s595_s21 = sshll.u32 %s762_s19, 3  ;;  %s611_s22 = sshll.u32 %s762_s19, 4  ;;  %v624_v4 = vld [vmem:[%s758_s2 + $0x2] ss:$0 sm:$0xff]  ;;  %vm334_vm1 = vcmask 130112   ;;  %vm364_vm2 = vcmask 130048  }
   0xe   : > { %s212_s27 = scalar_lea.vmem %s756_s0, %s595_s21  ;;  %s219_s30 = scalar_lea.vmem %s757_s1, %s611_s22  ;;  %v330_v27 = vand.u32 127, %v329_v23  ;;  %vm516_vm3 = vcmask 785408   ;;  %vm513_vm4 = vcmask 523264  }
   0xf   : > { %v707_v2 = vld [vmem:[%s212_s27] sm:$0xff]  ;;  %v230_v3 = vld [vmem:[%s219_s30 + $0x8] sm:$0xff]  ;;  %v232_v5 = vld [vmem:[%s219_s30 + $0x18] sm:$0xff]  ;;  %s225_s13 = scalar_lea.vmem %s760_s4, %s595_s21 }
  0x10   : > { %601 = vmatpush.xpose.msk.msra.mxu0 %vm243_vm0, %v230_v3  ;;  %v229_v6 = vld [vmem:[%s219_s30] sm:$0xff]  ;;  %v241_v7 = vmul.f32 %v625_v0, %v707_v2  ;;  %v714_v8 = vld [vmem:[%s212_s27 + $0x8] sm:$0xff]  ;;  %604 = vmatpush.xpose.msk.msra.mxu1 %vm243_vm0, %v232_v5  ;;  %v254_v10 = vmul.f32 %v623_v1, %v232_v5  ;;  %v231_v11 = vld [vmem:[%s219_s30 + $0x10] sm:$0xff]  ;;  %v238_v14 = vmul.f32 %v624_v4, %v707_v2  ;;  %v332_v28 = vadd.s32 4294967288, %v330_v27 }
  0x11   : > { %v251_v9 = vmul.f32 %v623_v1, %v229_v6  ;;  %404 = vmatpush.msra.mxu2 %v230_v3  ;;  %427 = vmatpush.msra.mxu3 %v232_v5  ;;  %v239_v16 = vmul.f32 %v624_v4, %v714_v8  ;;  %v253_v17 = vmul.f32 %v623_v1, %v231_v11 }
  0x12   : > { %v244_v12 = vsel %vm243_vm0, %v241_v7, 0.0  ;;  %v264_v15 = vsel %vm243_vm0, %v254_v10, 0.0  ;;  %v252_v18 = vmul.f32 %v623_v1, %v230_v3  ;;  %v242_v19 = vmul.f32 %v625_v0, %v714_v8 }
  0x13   : > { %v255_v13 = vsel %vm243_vm0, %v251_v9, 0.0  ;;  %245 = vadd.xlane.f32.xlu1 %v244_v12  ;;  %265 = vadd.xlane.f32.xlu2 %v264_v15  ;;  %v261_v20 = vsel %vm243_vm0, %v253_v17, 0.0 }
  0x14   : > { %256 = vadd.xlane.f32.xlu0 %v255_v13  ;;  %602 = vmatpush.xpose.msk.msra.mxu0 %vm243_vm0, %v229_v6  ;;  %v258_v21 = vsel %vm243_vm0, %v252_v18, 0.0  ;;  %v247_v22 = vsel %vm243_vm0, %v242_v19, 0.0 }
  0x15   : > { %605 = vmatpush.xpose.msk.msra.mxu1 %vm243_vm0, %v231_v11  ;;  %405 = vmatpush.msra.mxu2 %v229_v6 }
  0x16   : > { %428 = vmatpush.msra.mxu3 %v231_v11 }
  0x17   : > { %603 = vmatmul.msk.f32.vlgmr.msra.gmra.mxu0 %vm243_vm0, %v238_v14 }
  0x18   : > { %606 = vmatmul.msk.f32.vlgmr.msra.gmra.mxu1 %vm243_vm0, %v239_v16 }
  0x1b   : > { %262 = vadd.xlane.f32.xlu1 %v261_v20  ;;  %248 = vadd.xlane.f32.xlu2 %v247_v22 }
  0x1c   : > { %259 = vadd.xlane.f32.xlu0 %v258_v21 }
  0x86   : > { %v246_v24 = vpop.xlane.xlu1 %245  ;;  %v266_v26 = vpop.xlane.xlu2 %265 }
  0x87   : > { %v257_v25 = vpop.xlane.xlu0 %256  ;;  %v337_v31 = vperm.slane %v266_v26, %v332_v28 }
  0x88   : > { %v331_v35 = vperm.slane %v257_v25, %v330_v27 }
  0x8e   : > { %v263_v29 = vpop.xlane.xlu1 %262  ;;  %v249_v34 = vpop.xlane.xlu2 %248 }
  0x8f   : > { %v260_v30 = vpop.xlane.xlu0 %259  ;;  %v336_v32 = vperm.slane %v263_v29, %v330_v27 }
  0x90   : > { %v333_v33 = vperm.slane %v260_v30, %v332_v28 }
  0x91   : > { %v338_v39 = vsel %vm334_vm1, %v337_v31, %v336_v32 }
  0x92   : > { %v335_v40 = vsel %vm334_vm1, %v333_v33, %v331_v35 }
  0x94   : > { %v293_v36 = vpop.f32.mrf.mxu0 }
  0x95   : > { %v294_v37 = vadd.f32 %v293_v36, %v246_v24  ;;  %v322_v38 = vpop.f32.mrf.mxu1 }
  0x96   : > { %v323_v41 = vadd.f32 %v322_v38, %v249_v34 }
  0x97   : > { %v359_v43 = vadd.f32 %v335_v40, %v294_v37 }
  0x98   : > { %v360_v44 = vadd.f32 %v338_v39, %v323_v41 }
  0x99   : > { %v362_v45 = vadd.f32 %v361_v42, %v359_v43 }
  0x9a   : > { %v363_v46 = vadd.f32 %v361_v42, %v360_v44 }
  0x9b   : > { %v365_v47 = vsel %vm364_vm2, %v362_v45, -inf }
  0x9c   : > { %v368_v48 = vsel %vm364_vm2, %v363_v46, -inf  ;;  %366 = vmax.xlane.f32.xlu0 %v365_v47 }
  0x9d   : > { %369 = vmax.xlane.f32.xlu1 %v368_v48 }
 0x10f   : > { %v367_v49 = vpop.xlane.xlu0 %366 }
 0x110   : > { %v370_v50 = vpop.xlane.xlu1 %369  ;;  %v371_v51 = vsub.f32 %v362_v45, %v367_v49  ;;  %v433_v1 = vrot.slane %v367_v49, 4 }
 0x111   : > { %v372_v52 = vsub.f32 %v363_v46, %v370_v50  ;;  %v439_v3 = vrot.slane %v370_v50, 4 }
 0x112   : > { %v373_v53 = vmul.f32 1.442695, %v371_v51  ;;  %v434_v4 = vmax.f32 %v367_v49, %v433_v1 }
 0x113   : > { %v375_v54 = vmul.f32 1.442695, %v372_v52  ;;  %v440_v5 = vmax.f32 %v370_v50, %v439_v3 }
 0x114   : > { %626 = vpow2.f32 %v373_v53  ;;  %v435_v6 = vrot.slane %v434_v4, 2 }
 0x115   : > { %628 = vpow2.f32 %v375_v54  ;;  %v441_v7 = vrot.slane %v440_v5, 2 }
 0x116   : > { %v436_v9 = vmax.f32 %v434_v4, %v435_v6 }
 0x117   : > { %v442_v10 = vmax.f32 %v440_v5, %v441_v7 }
 0x118   : > { %v437_v11 = vrot.slane %v436_v9, 1 }
 0x119   : > { %v443_v12 = vrot.slane %v442_v10, 1 }
 0x11a   : > { %v627_v55 = vpop.eup %626  ;;  %v438_v13 = vmax.f32 %v436_v9, %v437_v11 }
 0x11b   : > { %v629_v56 = vpop.eup %628  ;;  %v377_v57 = vsel %vm364_vm2, %v627_v55, 0.0  ;;  %v444_v14 = vmax.f32 %v442_v10, %v443_v12 }
 0x11c   : > { %v380_v58 = vsel %vm364_vm2, %v629_v56, 0.0  ;;  %378 = vadd.xlane.f32.xlu2 %v377_v57  ;;  %v445_v15 = vsub.f32 %v367_v49, %v438_v13 }
 0x11d   : > { %381 = vadd.xlane.f32.xlu0 %v380_v58  ;;  %v446_v16 = vsub.f32 %v370_v50, %v444_v14 }
 0x11e   : > { %v447_v17 = vmul.f32 1.442695, %v445_v15 }
 0x11f   : > { %v449_v18 = vmul.f32 1.442695, %v446_v16 }
 0x18f   : > { %v379_v59 = vpop.xlane.xlu2 %378 }
 0x190   : > { %630 = vrcp.f32 %v379_v59  ;;  %v382_v60 = vpop.xlane.xlu0 %381 }
 0x191   : > { %632 = vrcp.f32 %v382_v60 }
 0x192   : > { %634 = vpow2.f32 %v447_v17 }
 0x193   : > { %636 = vpow2.f32 %v449_v18 }
 0x196   : > { %v631_v61 = vpop.eup %630 }
 0x197   : > { %v633_v62 = vpop.eup %632  ;;  %v385_v63 = vmul.f32 %v631_v61, %v627_v55 }
 0x198   : > { %v386_v0 = vmul.f32 %v633_v62, %v629_v56  ;;  %v635_v19 = vpop.eup %634 }
 0x199   : > { %607 = vmatmul.msk.f32.vlgmr.msra.gmra.mxu2 %vm364_vm2, %v385_v63  ;;  %v637_v20 = vpop.eup %636  ;;  %v451_v21 = vrot.slane %v635_v19, 4 }
 0x19a   : > { %608 = vmatmul.msk.f32.vlgmr.msra.gmra.mxu3 %vm364_vm2, %v386_v0  ;;  %v457_v22 = vrot.slane %v637_v20, 4 }
 0x19b   : > { %v452_v23 = vadd.f32 %v635_v19, %v451_v21 }
 0x19c   : > { %v458_v24 = vadd.f32 %v637_v20, %v457_v22 }
 0x19d   : > { %v453_v25 = vrot.slane %v452_v23, 2 }
 0x19e   : > { %v459_v26 = vrot.slane %v458_v24, 2 }
 0x19f   : > { %v454_v27 = vadd.f32 %v453_v25, %v452_v23 }
 0x1a0   : > { %v460_v28 = vadd.f32 %v459_v26, %v458_v24 }
 0x1a1   : > { %v455_v29 = vrot.slane %v454_v27, 1 }
 0x1a2   : > { %v461_v30 = vrot.slane %v460_v28, 1 }
 0x1a3   : > { %v456_v31 = vadd.f32 %v455_v29, %v454_v27 }
 0x1a4   : > { %v462_v32 = vadd.f32 %v461_v30, %v460_v28 }
 0x1a5   : > { %638 = vrcp.f32 %v456_v31 }
 0x1a6   : > { %640 = vrcp.f32 %v462_v32 }
 0x1ab   : > { %v639_v33 = vpop.eup %638 }
 0x1ac   : > { %v641_v34 = vpop.eup %640  ;;  %v465_v35 = vmul.f32 %v639_v33, %v635_v19 }
 0x1ad   : > { %v466_v36 = vmul.f32 %v641_v34, %v637_v20 }
 0x1ae   : > { %v467_v37 = vmul.f32 %v465_v35, %v707_v2 }
 0x1af   : > { %v468_v38 = vmul.f32 %v466_v36, %v714_v8 }
 0x1b0   : > { %v469_v39 = vsel %vm243_vm0, %v467_v37, 0.0 }
 0x1b1   : > { %v476_v40 = vsel %vm243_vm0, %v468_v38, 0.0  ;;  %v470_v41 = vrot.slane %v469_v39, 4 }
 0x1b2   : > { %v477_v42 = vrot.slane %v476_v40, 4 }
 0x1b3   : > { %v471_v43 = vadd.f32 %v470_v41, %v469_v39 }
 0x1b4   : > { %v478_v44 = vadd.f32 %v477_v42, %v476_v40 }
 0x1b5   : > { %v472_v45 = vrot.slane %v471_v43, 2 }
 0x1b6   : > { %v479_v46 = vrot.slane %v478_v44, 2 }
 0x1b7   : > { %v473_v47 = vadd.f32 %v472_v45, %v471_v43 }
 0x1b8   : > { %v480_v48 = vadd.f32 %v479_v46, %v478_v44 }
 0x1b9   : > { %v474_v49 = vrot.slane %v473_v47, 1 }
 0x1ba   : > { %v481_v53 = vrot.slane %v480_v48, 1 }
 0x1bb   : > { %v475_v54 = vadd.f32 %v474_v49, %v473_v47 }
 0x1bc   : > { %v482_v55 = vadd.f32 %v481_v53, %v480_v48 }
 0x1bd   : > { %v485_v56 = vmul.f32 %v475_v54, %v707_v2 }
 0x1be   : > { %v486_v58 = vmul.f32 %v482_v55, %v714_v8 }
 0x21c   : > { %v407_v50 = vpop.f32.mrf.mxu2 }
 0x21d   : > { %v483_v51 = vmul.f32 %v407_v50, %v707_v2  ;;  %v430_v52 = vpop.f32.mrf.mxu3  ;;  %489 = vrot.lane.b32.xlu1 %v407_v50, %s650_s8 }
 0x21e   : > { %491 = vrot.lane.b32.xlu2 %v430_v52, %s650_s8  ;;  %v484_v57 = vmul.f32 %v430_v52, %v714_v8 }
 0x21f   : > { %497 = vrot.lane.b32.xlu0 %v483_v51, %s651_s9 }
 0x225   : > { %505 = vrot.lane.b32.xlu1 %v485_v56, %s652_s10 }
 0x226   : > { %499 = vrot.lane.b32.xlu2 %v484_v57, %s651_s9 }
 0x227   : > { %507 = vrot.lane.b32.xlu0 %v486_v58, %s652_s10 }
 0x278   : > { %v492_v59 = vpop.permute.xlu2 %491 }
 0x279   : > { %v512_v3 = vsel %vm243_vm0, %v714_v8, %v492_v59 }
 0x280   : > { %v500_v63 = vpop.permute.xlu2 %499 }
 0x281   : > { %v515_v5 = vsel %vm513_vm4, %v512_v3, %v500_v63 }
 0x28f   : > { %v490_v60 = vpop.permute.xlu1 %489 }
 0x290   : > { %v511_v62 = vsel %vm243_vm0, %v707_v2, %v490_v60 }
 0x291   : > { %v498_v61 = vpop.permute.xlu0 %497 }
 0x292   : > { %v514_v0 = vsel %vm513_vm4, %v511_v62, %v498_v61 }
 0x297   : > { %v506_v1 = vpop.permute.xlu1 %505 }
 0x298   : > { %v517_v4 = vsel %vm516_vm3, %v514_v0, %v506_v1 }
 0x299   : > { %519 = vst [vmem:[%s225_s13] sm:$0xff] %v517_v4  ;;  %v508_v6 = vpop.permute.xlu0 %507 }
 0x29a   : > { %v518_v7 = vsel %vm516_vm3, %v515_v5, %v508_v6 }
 0x29b   : > { %520 = vst [vmem:[%s225_s13 + $0x8] sm:$0xff] %v518_v7 }
 0x29c PF: > { %s15_s17 = sadd.s32 1, %s648_s17  }
 0x29d   : > { %p12_p4 = scmp.ge.s32.totalorder %s15_s17, 6  }
 0x29f   :  { %14 = sbr.rel (!%p12_p4) target bundleno = 2 (0x2), region = 69 }

</bundles_post_ra>
